<compile_context>
chip_gen: v7x
topology: tpu7x:2x2x1
jax: 0.10.0
libtpu: 0.0.40
codegen_flags: <defaults>
</compile_context>

<pallas_src>
import functools

import jax
import jax.numpy as jnp
from jax import lax
from jax.experimental import pallas as pl
from jax.experimental.pallas import tpu as pltpu

BN_EPS = 1e-5
_CHUNK = 512          # batch elements (lanes) processed per MXU pass inside the kernel


def _round_up(n, m):
    return ((n + m - 1) // m) * m


def _mlp_kernel(x_ref, w1_ref, b1_ref, w2_ref, b2_ref, w3_ref, b3_ref,
                w4_ref, b4_ref, o_ref):
    """One batch tile.

    x_ref : (ncpt, 6, C) f32  -- ncpt lane-dense chunks, batch on the lane axis.
    w*    : bf16 weights (BN folded into w2/w3), b*: f32 biases shaped (out, 1).
    o_ref : (ncpt, 7, C) f32
    """
    n_chunks = x_ref.shape[0]

    # Tiny weights: load once per grid step, reuse across all chunks.
    w1 = w1_ref[...]; b1 = b1_ref[...]
    w2 = w2_ref[...]; b2 = b2_ref[...]
    w3 = w3_ref[...]; b3 = b3_ref[...]
    w4 = w4_ref[...]; b4 = b4_ref[...]

    def compute_chunk(c):
        xc = x_ref[c].astype(jnp.bfloat16)                               # (6, C)
        # inputLayer + relu   (dropout: identity in eval mode)
        h = jnp.dot(w1, xc, preferred_element_type=jnp.float32) + b1    # (64, C)
        h = jnp.maximum(h, 0.0).astype(jnp.bfloat16)
        # bnorm1 folded into hiddenLayer1, + relu
        h = jnp.dot(w2, h, preferred_element_type=jnp.float32) + b2     # (32, C)
        h = jnp.maximum(h, 0.0).astype(jnp.bfloat16)
        # bnorm2 folded into hiddenLayer2, + relu
        h = jnp.dot(w3, h, preferred_element_type=jnp.float32) + b3     # (16, C)
        h = jnp.maximum(h, 0.0).astype(jnp.bfloat16)
        # outputLayer (no activation)
        o_ref[c] = jnp.dot(w4, h, preferred_element_type=jnp.float32) + b4   # (7, C)

    if n_chunks == 1:
        compute_chunk(0)
    else:
        def body(c, carry):
            compute_chunk(c)
            return carry
        lax.fori_loop(0, n_chunks, body, 0, unroll=min(n_chunks, 8))


def prepare_params(p):
    """Fold eval-mode BatchNorms into the following Linears and cast weights to bf16.

    Input params use PyTorch orientation: W*: (out, in), b*: (out,), BN g/be/m/v: (feat,).
    Call once on the host; the result is what pet_matching_forward expects.
    """
    s1 = p["g1"] * lax.rsqrt(p["v1"] + BN_EPS)            # (64,)
    t1 = p["be1"] - p["m1"] * s1
    s2 = p["g2"] * lax.rsqrt(p["v2"] + BN_EPS)            # (32,)
    t2 = p["be2"] - p["m2"] * s2

    w2f = p["w2"] * s1[None, :]                            # (32, 64)
    b2f = p["b2"] + p["w2"] @ t1                           # (32,)
    w3f = p["w3"] * s2[None, :]                            # (16, 32)
    b3f = p["b3"] + p["w3"] @ t2                           # (16,)

    f32, bf16 = jnp.float32, jnp.bfloat16
    return dict(
        w1=p["w1"].astype(bf16), b1=p["b1"].reshape(-1, 1).astype(f32),
        w2=w2f.astype(bf16),     b2=b2f.reshape(-1, 1).astype(f32),
        w3=w3f.astype(bf16),     b3=b3f.reshape(-1, 1).astype(f32),
        w4=p["w4"].astype(bf16), b4=p["b4"].reshape(-1, 1).astype(f32),
    )


@functools.partial(jax.jit, static_argnames=("tb",))
def pet_matching_forward(x, prepared, tb=16384):
    """x: (B, 6) float32. prepared: output of prepare_params(). Returns (B, 7) float32."""
    B = x.shape[0]
    C = _CHUNK

    # Batch tile: as large as the batch allows (amortizes per-grid-step overhead), but
    # split into >=2 tiles when possible so both v7x TensorCores get work.
    TB = _round_up(min(max(int(tb), C), _round_up(B, C)), C)
    Bp = _round_up(B, TB)
    if Bp // TB == 1 and TB > C:
        TB = _round_up(pl.cdiv(Bp, 2), C)
        Bp = _round_up(B, TB)
    n_tiles = Bp // TB
    ncpt = TB // C                      # chunks per grid step

    # Lane-dense slabs (num_chunks, 6, C): batch on the lane axis inside each chunk.
    # pad + reshape + transpose fuse into a single XLA copy pass.
    xp = jnp.pad(x.astype(jnp.float32), ((0, Bp - B), (0, 0)))       # (Bp, 6)
    x3 = xp.reshape(Bp // C, C, 6).transpose(0, 2, 1)                # (Bp//C, 6, C)

    weight_args = (
        prepared["w1"], prepared["b1"], prepared["w2"], prepared["b2"],
        prepared["w3"], prepared["b3"], prepared["w4"], prepared["b4"],
    )

    def const_spec(a):
        # Tiny, grid-invariant arrays resident in VMEM across all grid steps.
        return pl.BlockSpec(a.shape, lambda i: (0,) * a.ndim)

    weight_bytes = sum(a.size * a.dtype.itemsize for a in weight_args)
    cost = pl.CostEstimate(
        flops=2 * Bp * (6 * 64 + 64 * 32 + 32 * 16 + 16 * 7),
        transcendentals=0,
        bytes_accessed=Bp * (6 + 7) * 4 + weight_bytes,
    )

    out3 = pl.pallas_call(
        _mlp_kernel,
        out_shape=jax.ShapeDtypeStruct((Bp // C, 7, C), jnp.float32),
        grid=(n_tiles,),
        in_specs=[pl.BlockSpec((ncpt, 6, C), lambda i: (i, 0, 0))]
                 + [const_spec(a) for a in weight_args],
        out_specs=pl.BlockSpec((ncpt, 7, C), lambda i: (i, 0, 0)),
        compiler_params=pltpu.CompilerParams(
            dimension_semantics=("parallel",),
            # I/O double buffers are ~128 B per batch element; intermediates live
            # per-chunk in vregs, so 32 MiB is ample on v5e / v6e / v7x.
            vmem_limit_bytes=32 * 1024 * 1024,
        ),
        cost_estimate=cost,
    )(x3, *weight_args)

    out = out3.transpose(0, 2, 1).reshape(Bp, 7)                     # (Bp, 7)
    return out[:B]


def _init_linear(key, fan_in, fan_out):
    # PyTorch nn.Linear default init: U(-1/sqrt(fan_in), 1/sqrt(fan_in)); W is (out, in).
    kw, kb = jax.random.split(key)
    bound = 1.0 / jnp.sqrt(fan_in)
    w = jax.random.uniform(kw, (fan_out, fan_in), jnp.float32, -bound, bound)
    b = jax.random.uniform(kb, (fan_out,), jnp.float32, -bound, bound)
    return w, b


def make_params(key):
    k1, k2, k3, k4 = jax.random.split(key, 4)
    w1, b1 = _init_linear(k1, 6, 64)
    w2, b2 = _init_linear(k2, 64, 32)
    w3, b3 = _init_linear(k3, 32, 16)
    w4, b4 = _init_linear(k4, 16, 7)
    return dict(
        w1=w1, b1=b1, w2=w2, b2=b2, w3=w3, b3=b3, w4=w4, b4=b4,
        # BatchNorm1d defaults (non-trivial values are set in __main__).
        g1=jnp.ones((64,), jnp.float32), be1=jnp.zeros((64,), jnp.float32),
        m1=jnp.zeros((64,), jnp.float32), v1=jnp.ones((64,), jnp.float32),
        g2=jnp.ones((32,), jnp.float32), be2=jnp.zeros((32,), jnp.float32),
        m2=jnp.zeros((32,), jnp.float32), v2=jnp.ones((32,), jnp.float32),
    )


def reference_forward(x, p):
    """Pure-JAX eval-mode reference in the original (unfolded, f32) formulation."""
    h = jnp.maximum(x @ p["w1"].T + p["b1"], 0.0)
    h = (h - p["m1"]) / jnp.sqrt(p["v1"] + BN_EPS) * p["g1"] + p["be1"]
    h = jnp.maximum(h @ p["w2"].T + p["b2"], 0.0)
    h = (h - p["m2"]) / jnp.sqrt(p["v2"] + BN_EPS) * p["g2"] + p["be2"]
    h = jnp.maximum(h @ p["w3"].T + p["b3"], 0.0)
    return h @ p["w4"].T + p["b4"]


if __name__ == "__main__":
    key = jax.random.PRNGKey(0)
    k_x, k_p, k_bn, k_x2 = jax.random.split(key, 4)

    params = make_params(k_p)
    # Non-trivial running BN stats / affine params so BN folding is actually tested.
    kb1, kb2, kb3, kb4 = jax.random.split(k_bn, 4)
    params["m1"] = 0.1 * jax.random.normal(kb1, (64,), jnp.float32)
    params["v1"] = 1.0 + 0.1 * jax.random.uniform(kb2, (64,), jnp.float32)
    params["g1"] = 1.0 + 0.05 * jax.random.normal(kb3, (64,), jnp.float32)
    params["be1"] = 0.05 * jax.random.normal(kb4, (64,), jnp.float32)
    params["m2"] = 0.1 * jax.random.normal(kb2, (32,), jnp.float32)
    params["v2"] = 1.0 + 0.1 * jax.random.uniform(kb3, (32,), jnp.float32)

    prepared = prepare_params(params)   # fold BN + bf16 cast, once, outside the jit

    # Case 1: small batch -> single grid tile, single in-kernel chunk.
    B1 = 256
    x1 = jax.random.normal(k_x, (B1, 6), jnp.float32)
    out1 = jax.block_until_ready(pet_matching_forward(x1, prepared))
    ref1 = reference_forward(x1, params)
    assert out1.shape == (B1, 7), out1.shape
    # bf16 weights/activations (f32 accumulation) -> loosened tolerance vs f32 reference.
    assert jnp.allclose(out1, ref1, atol=5e-2, rtol=5e-2), "case-1 mismatch vs reference"

    # Case 2: non-multiple batch -> 2 grid tiles (megacore path), 3 chunks per tile
    # (fori_loop path) and a zero-padded tail that is sliced off.
    B2 = 1600
    x2 = jax.random.normal(k_x2, (B2, 6), jnp.float32)
    out2 = jax.block_until_ready(pet_matching_forward(x2, prepared, tb=1536))
    ref2 = reference_forward(x2, params)
    assert out2.shape == (B2, 7), out2.shape
    assert jnp.allclose(out2, ref2, atol=5e-2, rtol=5e-2), "case-2 mismatch vs reference"

    print("KERNEL_OK")
</pallas_src>

<mosaic_0001>
module attributes {stable_mosaic.version = 11 : i64} {
  func.func @_mlp_kernel(%arg0: i32, %arg1: memref<1x6x512xf32, #tpu.memory_space<vmem>>, %arg2: memref<64x6xbf16, #tpu.memory_space<vmem>>, %arg3: memref<64x1xf32, #tpu.memory_space<vmem>>, %arg4: memref<32x64xbf16, #tpu.memory_space<vmem>>, %arg5: memref<32x1xf32, #tpu.memory_space<vmem>>, %arg6: memref<16x32xbf16, #tpu.memory_space<vmem>>, %arg7: memref<16x1xf32, #tpu.memory_space<vmem>>, %arg8: memref<7x16xbf16, #tpu.memory_space<vmem>>, %arg9: memref<7x1xf32, #tpu.memory_space<vmem>>, %arg10: memref<1x7x512xf32, #tpu.memory_space<vmem>>) attributes {dimension_semantics = [#tpu.dimension_semantics<parallel>], iteration_bounds = array<i64: 1>, scalar_prefetch = 0 : i64, scratch_operands = 0 : i64, tpu.core_type = #tpu.core_type<tc>, window_params = [{transform_indices = @transform_0, window_bounds = array<i64: 1, 6, 512>}, {pipeline_mode = #tpu.pipeline_mode<synchronous>, transform_indices = @transform_1, window_bounds = array<i64: 64, 6>}, {pipeline_mode = #tpu.pipeline_mode<synchronous>, transform_indices = @transform_2, window_bounds = array<i64: 64, 1>}, {pipeline_mode = #tpu.pipeline_mode<synchronous>, transform_indices = @transform_3, window_bounds = array<i64: 32, 64>}, {pipeline_mode = #tpu.pipeline_mode<synchronous>, transform_indices = @transform_4, window_bounds = array<i64: 32, 1>}, {pipeline_mode = #tpu.pipeline_mode<synchronous>, transform_indices = @transform_5, window_bounds = array<i64: 16, 32>}, {pipeline_mode = #tpu.pipeline_mode<synchronous>, transform_indices = @transform_6, window_bounds = array<i64: 16, 1>}, {pipeline_mode = #tpu.pipeline_mode<synchronous>, transform_indices = @transform_7, window_bounds = array<i64: 7, 16>}, {pipeline_mode = #tpu.pipeline_mode<synchronous>, transform_indices = @transform_8, window_bounds = array<i64: 7, 1>}, {transform_indices = @transform_9, window_bounds = array<i64: 1, 7, 512>}]} {
    %c0 = arith.constant 0 : index
    %c0_0 = arith.constant 0 : index
    %0 = vector.load %arg2[%c0, %c0_0] : memref<64x6xbf16, #tpu.memory_space<vmem>>, vector<64x6xbf16>
    %c0_1 = arith.constant 0 : index
    %c0_2 = arith.constant 0 : index
    %1 = vector.load %arg3[%c0_1, %c0_2] : memref<64x1xf32, #tpu.memory_space<vmem>>, vector<64x1xf32>
    %c0_3 = arith.constant 0 : index
    %c0_4 = arith.constant 0 : index
    %2 = vector.load %arg4[%c0_3, %c0_4] : memref<32x64xbf16, #tpu.memory_space<vmem>>, vector<32x64xbf16>
    %c0_5 = arith.constant 0 : index
    %c0_6 = arith.constant 0 : index
    %3 = vector.load %arg5[%c0_5, %c0_6] : memref<32x1xf32, #tpu.memory_space<vmem>>, vector<32x1xf32>
    %c0_7 = arith.constant 0 : index
    %c0_8 = arith.constant 0 : index
    %4 = vector.load %arg6[%c0_7, %c0_8] : memref<16x32xbf16, #tpu.memory_space<vmem>>, vector<16x32xbf16>
    %c0_9 = arith.constant 0 : index
    %c0_10 = arith.constant 0 : index
    %5 = vector.load %arg7[%c0_9, %c0_10] : memref<16x1xf32, #tpu.memory_space<vmem>>, vector<16x1xf32>
    %c0_11 = arith.constant 0 : index
    %c0_12 = arith.constant 0 : index
    %6 = vector.load %arg8[%c0_11, %c0_12] : memref<7x16xbf16, #tpu.memory_space<vmem>>, vector<7x16xbf16>
    %c0_13 = arith.constant 0 : index
    %c0_14 = arith.constant 0 : index
    %7 = vector.load %arg9[%c0_13, %c0_14] : memref<7x1xf32, #tpu.memory_space<vmem>>, vector<7x1xf32>
    %c0_15 = arith.constant 0 : index
    %c0_16 = arith.constant 0 : index
    %c0_17 = arith.constant 0 : index
    %8 = vector.load %arg1[%c0_15, %c0_16, %c0_17] : memref<1x6x512xf32, #tpu.memory_space<vmem>>, vector<1x6x512xf32>
    %9 = vector.shape_cast %8 : vector<1x6x512xf32> to vector<6x512xf32>
    %10 = arith.truncf %9 : vector<6x512xf32> to vector<6x512xbf16>
    %cst = arith.constant dense<0.000000e+00> : vector<64x512xf32>
    %11 = tpu.matmul %0, %10, %cst {dimension_numbers = #tpu.dot_dimension_numbers<[1], [0], [0], [1], [0, 0, 1, 1], [], []>} : vector<64x6xbf16>, vector<6x512xbf16>, vector<64x512xf32> -> vector<64x512xf32>
    %12 = vector.broadcast %1 : vector<64x1xf32> to vector<64x512xf32>
    %13 = arith.addf %11, %12 : vector<64x512xf32>
    %cst_18 = arith.constant 0.000000e+00 : f32
    %14 = vector.broadcast %cst_18 : f32 to vector<64x512xf32>
    %15 = arith.maximumf %13, %14 : vector<64x512xf32>
    %16 = arith.truncf %15 : vector<64x512xf32> to vector<64x512xbf16>
    %cst_19 = arith.constant dense<0.000000e+00> : vector<32x512xf32>
    %17 = tpu.matmul %2, %16, %cst_19 {dimension_numbers = #tpu.dot_dimension_numbers<[1], [0], [0], [1], [0, 0, 1, 1], [], []>} : vector<32x64xbf16>, vector<64x512xbf16>, vector<32x512xf32> -> vector<32x512xf32>
    %18 = vector.broadcast %3 : vector<32x1xf32> to vector<32x512xf32>
    %19 = arith.addf %17, %18 : vector<32x512xf32>
    %cst_20 = arith.constant 0.000000e+00 : f32
    %20 = vector.broadcast %cst_20 : f32 to vector<32x512xf32>
    %21 = arith.maximumf %19, %20 : vector<32x512xf32>
    %22 = arith.truncf %21 : vector<32x512xf32> to vector<32x512xbf16>
    %cst_21 = arith.constant dense<0.000000e+00> : vector<16x512xf32>
    %23 = tpu.matmul %4, %22, %cst_21 {dimension_numbers = #tpu.dot_dimension_numbers<[1], [0], [0], [1], [0, 0, 1, 1], [], []>} : vector<16x32xbf16>, vector<32x512xbf16>, vector<16x512xf32> -> vector<16x512xf32>
    %24 = vector.broadcast %5 : vector<16x1xf32> to vector<16x512xf32>
    %25 = arith.addf %23, %24 : vector<16x512xf32>
    %cst_22 = arith.constant 0.000000e+00 : f32
    %26 = vector.broadcast %cst_22 : f32 to vector<16x512xf32>
    %27 = arith.maximumf %25, %26 : vector<16x512xf32>
    %28 = arith.truncf %27 : vector<16x512xf32> to vector<16x512xbf16>
    %cst_23 = arith.constant dense<0.000000e+00> : vector<7x512xf32>
    %29 = tpu.matmul %6, %28, %cst_23 {dimension_numbers = #tpu.dot_dimension_numbers<[1], [0], [0], [1], [0, 0, 1, 1], [], []>} : vector<7x16xbf16>, vector<16x512xbf16>, vector<7x512xf32> -> vector<7x512xf32>
    %30 = vector.broadcast %7 : vector<7x1xf32> to vector<7x512xf32>
    %31 = arith.addf %29, %30 : vector<7x512xf32>
    %c0_24 = arith.constant 0 : index
    %c0_25 = arith.constant 0 : index
    %c0_26 = arith.constant 0 : index
    %32 = vector.load %arg10[%c0_24, %c0_25, %c0_26] : memref<1x7x512xf32, #tpu.memory_space<vmem>>, vector<1x7x512xf32>
    %33 = vector.shape_cast %32 : vector<1x7x512xf32> to vector<7x512xf32>
    %34 = vector.shape_cast %31 : vector<7x512xf32> to vector<1x7x512xf32>
    tpu.vector_store %arg10[%c0_24, %c0_25, %c0_26], %34 {strides = array<i32>} : memref<1x7x512xf32, #tpu.memory_space<vmem>>, vector<1x7x512xf32>,
    return
  }
  func.func @transform_0(%arg0: i32) -> (i32, i32, i32) {
    %c0_i32 = arith.constant 0 : i32
    %c0_i32_0 = arith.constant 0 : i32
    %c0_i32_1 = arith.constant 0 : i32
    return %arg0, %c0_i32, %c0_i32_0 : i32, i32, i32
  }
  func.func @transform_1(%arg0: i32) -> (i32, i32) {
    %c0_i32 = arith.constant 0 : i32
    %c0_i32_0 = arith.constant 0 : i32
    %c0_i32_1 = arith.constant 0 : i32
    return %c0_i32, %c0_i32_0 : i32, i32
  }
  func.func @transform_2(%arg0: i32) -> (i32, i32) {
    %c0_i32 = arith.constant 0 : i32
    %c0_i32_0 = arith.constant 0 : i32
    %c0_i32_1 = arith.constant 0 : i32
    return %c0_i32, %c0_i32_0 : i32, i32
  }
  func.func @transform_3(%arg0: i32) -> (i32, i32) {
    %c0_i32 = arith.constant 0 : i32
    %c0_i32_0 = arith.constant 0 : i32
    %c0_i32_1 = arith.constant 0 : i32
    return %c0_i32, %c0_i32_0 : i32, i32
  }
  func.func @transform_4(%arg0: i32) -> (i32, i32) {
    %c0_i32 = arith.constant 0 : i32
    %c0_i32_0 = arith.constant 0 : i32
    %c0_i32_1 = arith.constant 0 : i32
    return %c0_i32, %c0_i32_0 : i32, i32
  }
  func.func @transform_5(%arg0: i32) -> (i32, i32) {
    %c0_i32 = arith.constant 0 : i32
    %c0_i32_0 = arith.constant 0 : i32
    %c0_i32_1 = arith.constant 0 : i32
    return %c0_i32, %c0_i32_0 : i32, i32
  }
  func.func @transform_6(%arg0: i32) -> (i32, i32) {
    %c0_i32 = arith.constant 0 : i32
    %c0_i32_0 = arith.constant 0 : i32
    %c0_i32_1 = arith.constant 0 : i32
    return %c0_i32, %c0_i32_0 : i32, i32
  }
  func.func @transform_7(%arg0: i32) -> (i32, i32) {
    %c0_i32 = arith.constant 0 : i32
    %c0_i32_0 = arith.constant 0 : i32
    %c0_i32_1 = arith.constant 0 : i32
    return %c0_i32, %c0_i32_0 : i32, i32
  }
  func.func @transform_8(%arg0: i32) -> (i32, i32) {
    %c0_i32 = arith.constant 0 : i32
    %c0_i32_0 = arith.constant 0 : i32
    %c0_i32_1 = arith.constant 0 : i32
    return %c0_i32, %c0_i32_0 : i32, i32
  }
  func.func @transform_9(%arg0: i32) -> (i32, i32, i32) {
    %c0_i32 = arith.constant 0 : i32
    %c0_i32_0 = arith.constant 0 : i32
    %c0_i32_1 = arith.constant 0 : i32
    return %arg0, %c0_i32, %c0_i32_0 : i32, i32, i32
  }
}

</mosaic_0001>

<bundles_post_ra>
// kernel: pet_matching_forward.1
= control target key start
LH: loop header
LB: loop body
LE: loop exit
PB: predicated region body
PF: predicated region fallthrough
CT: control target
= control target key end

     0   :  { %vm144_vm0 = vcmask 1042432   ;;  %v769_v3 = vmov 0   ;;  %vm131_vm1 = vcmask 48128   ;;  %vm381_vm2 = vcmask 523264   ;;  %s943_s0 = inlined_call_operand.vmem [shape: f32[1,6,512], index: 0, kind: input, shape index: {}]   ;;  %s944_s1 = inlined_call_operand.vmem [shape: bf16[64,6], index: 1, kind: input, shape index: {}]   ;;  %s945_s2 = inlined_call_operand.vmem [shape: f32[64,1], index: 2, kind: input, shape index: {}]   ;;  %s946_s4 = inlined_call_operand.vmem [shape: f32[32,1], index: 4, kind: input, shape index: {}]   ;;  %s947_s6 = inlined_call_operand.vmem [shape: f32[16,1], index: 6, kind: input, shape index: {}]   ;;  %s948_s8 = inlined_call_operand.vmem [shape: f32[7,1], index: 8, kind: input, shape index: {}]   ;;  %s949_s3 = inlined_call_operand.vmem [shape: bf16[32,64], index: 3, kind: input, shape index: {}]   ;;  %s950_s5 = inlined_call_operand.vmem [shape: bf16[16,32], index: 5, kind: input, shape index: {}]   ;;  %s951_s7 = inlined_call_operand.vmem [shape: bf16[7,16], index: 7, kind: input, shape index: {}]   ;;  %s952_s9 = inlined_call_operand.vmem [shape: f32[1,7,512], index: 9, kind: output, shape index: {}]  }
   0x1   :  { %v64_v0 = vld [vmem:[%s943_s0 + $0x8] sm:$0x3f]  ;;  %v66_v1 = vld [vmem:[%s943_s0 + $0x18] sm:$0x3f]  ;;  %v63_v2 = vld [vmem:[%s943_s0] sm:$0x3f]  ;;  %189 = vmatprep.mubr.bf16.mxu0 %v769_v3  ;;  %262 = vmatprep.mubr.bf16.mxu1 %v769_v3 }
   0x2   :  { %v68_v4 = vpack.c.bf16 %v64_v0, %v64_v0  ;;  %v70_v5 = vpack.c.bf16 %v66_v1, %v66_v1  ;;  %v67_v6 = vpack.c.bf16 %v63_v2, %v63_v2  ;;  %v65_v7 = vld [vmem:[%s943_s0 + $0x10] sm:$0x3f]  ;;  %760 = vset.pattern.permute.xlu0 %v769_v3  ;;  %761 = vset.pattern.permute.xlu1 %v769_v3  ;;  %v762_v10 = vld [vmem:[%s944_s1] sm:$0xff]   ;;  %v42_v14 = vld [vmem:[%s945_s2 + $0x8] sm:$0xff]  ;;  %vm533_vm3 = vcmask 261120  }
   0x3   :  { %v69_v8 = vpack.c.bf16 %v65_v7, %v65_v7  ;;  %v41_v12 = vld [vmem:[%s945_s2] sm:$0xff]  ;;  %v43_v13 = vld [vmem:[%s945_s2 + $0x10] sm:$0xff]  ;;  %v44_v15 = vld [vmem:[%s945_s2 + $0x18] sm:$0xff]  ;;  %vm640_vm4 = vcmask 130048  }
   0x4   :  { %738 = vmatprep.subr.msk.bf16.mxu0 %vm144_vm0, %v68_v4  ;;  %743 = vmatprep.subr.msk.bf16.mxu1 %vm144_vm0, %v70_v5  ;;  %v146_v9 = vsel %vm144_vm0, %v67_v6, 0  ;;  %v763_v16 = vld [vmem:[%s944_s1 + $0x8] sm:$0xff]   ;;  %v45_v17 = vld [vmem:[%s945_s2 + $0x20] sm:$0xff]  ;;  %v47_v19 = vld [vmem:[%s945_s2 + $0x30] sm:$0xff] }
   0x5   :  { %158 = vmatpush1.bf16.msra.mxu0 %v146_v9  ;;  %v152_v11 = vsel %vm144_vm0, %v69_v8, 0  ;;  %73 = vperm.xlu0 %760, %v41_v12   ;;  %v46_v18 = vld [vmem:[%s945_s2 + $0x28] sm:$0xff]  ;;  %v48_v20 = vld [vmem:[%s945_s2 + $0x38] sm:$0xff]  ;;  %v764_v21 = vld [vmem:[%s944_s1 + $0x10] sm:$0xff]  }
   0x6   :  { %231 = vmatpush1.bf16.msra.mxu1 %v152_v11  ;;  %83 = vperm.xlu1 %761, %v43_v13   ;;  %v53_v22 = vld [vmem:[%s946_s4] sm:$0xff]  ;;  %v54_v23 = vld [vmem:[%s946_s4 + $0x8] sm:$0xff]  ;;  %v55_v24 = vld [vmem:[%s946_s4 + $0x10] sm:$0xff] }
   0x7   :  { %v56_v25 = vld [vmem:[%s946_s4 + $0x18] sm:$0xff]  ;;  %v59_v27 = vld [vmem:[%s947_s6] sm:$0xff]  ;;  %v60_v28 = vld [vmem:[%s947_s6 + $0x8] sm:$0xff] }
   0x8   :  { %739 = vmatmul.mubr.msk.bf16.vlgmr.msra.gmra.mrb[0].mxu0 %vm131_vm1, %v762_v10  ;;  %v765_v26 = vld [vmem:[%s944_s1 + $0x18] sm:$0xff]   ;;  %v62_v29 = vld [vmem:[%s948_s8] sm:$0x7f] }
   0x9   :  { %744 = vmatmul.mubr.msk.bf16.vlgmr.msra.gmra.mrb[0].mxu1 %vm131_vm1, %v762_v10  ;;  %199 = vmatprep.mubr.bf16.mxu0 %v769_v3 }
   0xa   :  { %272 = vmatprep.mubr.bf16.mxu1 %v769_v3  ;;  %78 = vperm.xlu0 %760, %v42_v14  }
   0xb   :  { %88 = vperm.xlu1 %761, %v44_v15  }
   0xe   :  { %93 = vperm.xlu0 %760, %v45_v17  }
   0xf   :  { %98 = vperm.xlu1 %761, %v46_v18  }
  0x10   :  { %740 = vmatmul.mubr.msk.bf16.gmra.mrb[4].mxu0 %vm131_vm1, %v763_v16 }
  0x11   :  { %745 = vmatmul.mubr.msk.bf16.gmra.mrb[4].mxu1 %vm131_vm1, %v763_v16  ;;  %209 = vmatprep.mubr.bf16.mxu0 %v769_v3 }
  0x12   :  { %282 = vmatprep.mubr.bf16.mxu1 %v769_v3  ;;  %103 = vperm.xlu0 %760, %v47_v19  }
  0x13   :  { %108 = vperm.xlu1 %761, %v48_v20  }
  0x16   :  { %353 = vperm.xlu0 %760, %v53_v22  }
  0x17   :  { %358 = vperm.xlu1 %761, %v54_v23  }
  0x18   :  { %741 = vmatmul.mubr.msk.bf16.gmra.mrb[8].mxu0 %vm131_vm1, %v764_v21 }
  0x19   :  { %746 = vmatmul.mubr.msk.bf16.gmra.mrb[8].mxu1 %vm131_vm1, %v764_v21  ;;  %219 = vmatprep.mubr.bf16.mxu0 %v769_v3 }
  0x1a   :  { %292 = vmatprep.mubr.bf16.mxu1 %v769_v3  ;;  %363 = vperm.xlu0 %760, %v55_v24  }
  0x1b   :  { %368 = vperm.xlu1 %761, %v56_v25  }
  0x1e   :  { %520 = vperm.xlu0 %760, %v59_v27  }
  0x1f   :  { %525 = vperm.xlu1 %761, %v60_v28  }
  0x20   :  { %742 = vmatmul.mubr.msk.bf16.gmra.mrb[12].mxu0 %vm131_vm1, %v765_v26 }
  0x21   :  { %747 = vmatmul.mubr.msk.bf16.gmra.mrb[12].mxu1 %vm131_vm1, %v765_v26  ;;  %420 = vmatprep.mubr.bf16.mxu0 %v769_v3 }
  0x22   :  { %473 = vmatprep.mubr.bf16.mxu1 %v769_v3  ;;  %637 = vperm.xlu0 %760, %v62_v29  }
  0x84   :  { %v74_v30 = vpop.permute.xlu0 %73 }
  0x85   :  { %v84_v31 = vpop.permute.xlu1 %83 }
  0x89   :  { %v79_v32 = vpop.permute.xlu0 %78 }
  0x8a   :  { %v89_v58 = vpop.permute.xlu1 %88 }
  0x8d   :  { %v94_v21 = vpop.permute.xlu0 %93 }
  0x8e   :  { %v99_v25 = vpop.permute.xlu1 %98 }
  0xdb   :  { %v191_v33 = vpop.f32.mrb[0].mxu0 }
  0xdc   :  { %v192_v34 = vadd.f32 %v191_v33, %v74_v30  ;;  %v264_v35 = vpop.f32.mrb[0].mxu1  ;;  %v193_v36 = vpop.f32.mrb[1].mxu0 }
  0xdd   :  { %v265_v37 = vadd.f32 %v264_v35, %v74_v30  ;;  %v194_v38 = vadd.f32 %v193_v36, %v74_v30  ;;  %v266_v39 = vpop.f32.mrb[1].mxu1  ;;  %v195_v40 = vpop.f32.mrb[2].mxu0 }
  0xde   :  { %v267_v41 = vadd.f32 %v266_v39, %v74_v30  ;;  %v196_v42 = vadd.f32 %v195_v40, %v79_v32  ;;  %v268_v43 = vpop.f32.mrb[2].mxu1  ;;  %v197_v44 = vpop.f32.mrb[3].mxu0  ;;  %v303_v48 = vmax.f32 %v192_v34, 0.0 }
  0xdf   :  { %v269_v45 = vadd.f32 %v268_v43, %v79_v32  ;;  %v198_v46 = vadd.f32 %v197_v44, %v79_v32  ;;  %v270_v47 = vpop.f32.mrb[3].mxu1  ;;  %v305_v51 = vmax.f32 %v265_v37, 0.0  ;;  %v304_v52 = vmax.f32 %v194_v38, 0.0 }
  0xe0   :  { %v307_v49 = vmax.f32 %v196_v42, 0.0  ;;  %v271_v50 = vadd.f32 %v270_v47, %v79_v32  ;;  %v306_v55 = vmax.f32 %v267_v41, 0.0 }
  0xe1   :  { %v309_v53 = vmax.f32 %v269_v45, 0.0  ;;  %v308_v54 = vmax.f32 %v198_v46, 0.0 }
  0xe2   :  { %v335_v56 = vpack.c.bf16 %v307_v49, %v303_v48  ;;  %v310_v57 = vmax.f32 %v271_v50, 0.0 }
  0xe3   :  { %v337_v59 = vpack.c.bf16 %v309_v53, %v305_v51  ;;  %v336_v60 = vpack.c.bf16 %v308_v54, %v304_v52  ;;  %v201_v61 = vpop.f32.mrb[4].mxu0  ;;  %v104_v51 = vpop.permute.xlu0 %103 }
  0xe4   :  { %v338_v62 = vpack.c.bf16 %v310_v57, %v306_v55  ;;  %v202_v63 = vadd.f32 %v201_v61, %v84_v31  ;;  %v274_v0 = vpop.f32.mrb[4].mxu1  ;;  %v203_v1 = vpop.f32.mrb[5].mxu0 }
  0xe5   :  { %v275_v2 = vadd.f32 %v274_v0, %v84_v31  ;;  %v204_v4 = vadd.f32 %v203_v1, %v84_v31  ;;  %v276_v5 = vpop.f32.mrb[5].mxu1  ;;  %v205_v6 = vpop.f32.mrb[6].mxu0  ;;  %388 = vmatprep.subr.bf16.mxu0 %v336_v60 }
  0xe6   :  { %v277_v7 = vadd.f32 %v276_v5, %v84_v31  ;;  %v206_v8 = vadd.f32 %v205_v6, %v89_v58  ;;  %v278_v9 = vpop.f32.mrb[6].mxu1  ;;  %441 = vmatprep.subr.bf16.mxu1 %v338_v62  ;;  %v207_v10 = vpop.f32.mrb[7].mxu0  ;;  %389 = vmatpush1.bf16.msra.mxu0 %v335_v56  ;;  %v311_v14 = vmax.f32 %v202_v63, 0.0 }
  0xe7   :  { %v279_v11 = vadd.f32 %v278_v9, %v89_v58  ;;  %v208_v12 = vadd.f32 %v207_v10, %v89_v58  ;;  %v280_v13 = vpop.f32.mrb[7].mxu1  ;;  %442 = vmatpush1.bf16.msra.mxu1 %v337_v59  ;;  %v313_v17 = vmax.f32 %v275_v2, 0.0  ;;  %v312_v18 = vmax.f32 %v204_v4, 0.0  ;;  %v109_v55 = vpop.permute.xlu1 %108 }
  0xe8   :  { %v315_v15 = vmax.f32 %v206_v8, 0.0  ;;  %v281_v16 = vadd.f32 %v280_v13, %v89_v58  ;;  %v314_v22 = vmax.f32 %v277_v7, 0.0 }
  0xe9   :  { %v317_v19 = vmax.f32 %v279_v11, 0.0  ;;  %v316_v20 = vmax.f32 %v208_v12, 0.0 }
  0xea   :  { %v339_v23 = vpack.c.bf16 %v315_v15, %v311_v14  ;;  %v318_v24 = vmax.f32 %v281_v16, 0.0 }
  0xeb   :  { %v341_v26 = vpack.c.bf16 %v317_v19, %v313_v17  ;;  %v340_v27 = vpack.c.bf16 %v316_v20, %v312_v18  ;;  %v211_v28 = vpop.f32.mrb[8].mxu0 }
  0xec   :  { %v342_v29 = vpack.c.bf16 %v318_v24, %v314_v22  ;;  %v212_v30 = vadd.f32 %v211_v28, %v94_v21  ;;  %v284_v31 = vpop.f32.mrb[8].mxu1  ;;  %v213_v32 = vpop.f32.mrb[9].mxu0  ;;  %v766_v24 = vld [vmem:[%s949_s3] sm:$0xff]  }
  0xed   :  { %v285_v33 = vadd.f32 %v284_v31, %v94_v21  ;;  %v214_v34 = vadd.f32 %v213_v32, %v94_v21  ;;  %v286_v35 = vpop.f32.mrb[9].mxu1  ;;  %v215_v36 = vpop.f32.mrb[10].mxu0  ;;  %390 = vmatprep.subr.bf16.mxu0 %v340_v27 }
  0xee   :  { %v287_v37 = vadd.f32 %v286_v35, %v94_v21  ;;  %v216_v38 = vadd.f32 %v215_v36, %v99_v25  ;;  %v288_v39 = vpop.f32.mrb[10].mxu1  ;;  %443 = vmatprep.subr.bf16.mxu1 %v342_v29  ;;  %v217_v40 = vpop.f32.mrb[11].mxu0  ;;  %391 = vmatpush1.bf16.msra.mxu0 %v339_v23  ;;  %v319_v44 = vmax.f32 %v212_v30, 0.0 }
  0xef   :  { %v289_v41 = vadd.f32 %v288_v39, %v99_v25  ;;  %v218_v42 = vadd.f32 %v217_v40, %v99_v25  ;;  %v290_v43 = vpop.f32.mrb[11].mxu1  ;;  %444 = vmatpush1.bf16.msra.mxu1 %v341_v26  ;;  %v321_v47 = vmax.f32 %v285_v33, 0.0  ;;  %v320_v48 = vmax.f32 %v214_v34, 0.0  ;;  %v354_v26 = vpop.permute.xlu0 %353 }
  0xf0   :  { %v323_v45 = vmax.f32 %v216_v38, 0.0  ;;  %v291_v46 = vadd.f32 %v290_v43, %v99_v25  ;;  %v322_v52 = vmax.f32 %v287_v37, 0.0  ;;  %v767_v25 = vld [vmem:[%s949_s3 + $0x8] sm:$0xff]   ;;  %v359_v27 = vpop.permute.xlu1 %358 }
  0xf1   :  { %v325_v49 = vmax.f32 %v289_v41, 0.0  ;;  %v324_v50 = vmax.f32 %v218_v42, 0.0 }
  0xf2   :  { %v343_v53 = vpack.c.bf16 %v323_v45, %v319_v44  ;;  %v326_v54 = vmax.f32 %v291_v46, 0.0 }
  0xf3   :  { %v345_v56 = vpack.c.bf16 %v325_v49, %v321_v47  ;;  %v344_v57 = vpack.c.bf16 %v324_v50, %v320_v48  ;;  %v221_v58 = vpop.f32.mrb[12].mxu0  ;;  %v364_v50 = vpop.permute.xlu0 %363 }
  0xf4   :  { %v346_v59 = vpack.c.bf16 %v326_v54, %v322_v52  ;;  %v222_v60 = vadd.f32 %v221_v58, %v104_v51  ;;  %v294_v61 = vpop.f32.mrb[12].mxu1  ;;  %v223_v62 = vpop.f32.mrb[13].mxu0 }
  0xf5   :  { %v295_v63 = vadd.f32 %v294_v61, %v104_v51  ;;  %v224_v0 = vadd.f32 %v223_v62, %v104_v51  ;;  %v296_v1 = vpop.f32.mrb[13].mxu1  ;;  %v225_v2 = vpop.f32.mrb[14].mxu0  ;;  %392 = vmatprep.subr.bf16.mxu0 %v344_v57 }
  0xf6   :  { %v297_v4 = vadd.f32 %v296_v1, %v104_v51  ;;  %v226_v5 = vadd.f32 %v225_v2, %v109_v55  ;;  %v298_v6 = vpop.f32.mrb[14].mxu1  ;;  %445 = vmatprep.subr.bf16.mxu1 %v346_v59  ;;  %v227_v7 = vpop.f32.mrb[15].mxu0  ;;  %393 = vmatpush1.bf16.msra.mxu0 %v343_v53  ;;  %v327_v11 = vmax.f32 %v222_v60, 0.0 }
  0xf7   :  { %v299_v8 = vadd.f32 %v298_v6, %v109_v55  ;;  %v228_v9 = vadd.f32 %v227_v7, %v109_v55  ;;  %v300_v10 = vpop.f32.mrb[15].mxu1  ;;  %446 = vmatpush1.bf16.msra.mxu1 %v345_v56  ;;  %v329_v14 = vmax.f32 %v295_v63, 0.0  ;;  %v328_v15 = vmax.f32 %v224_v0, 0.0  ;;  %v369_v54 = vpop.permute.xlu1 %368 }
  0xf8   :  { %v331_v12 = vmax.f32 %v226_v5, 0.0  ;;  %v301_v13 = vadd.f32 %v300_v10, %v109_v55  ;;  %v330_v18 = vmax.f32 %v297_v4, 0.0 }
  0xf9   :  { %v333_v16 = vmax.f32 %v299_v8, 0.0  ;;  %v332_v17 = vmax.f32 %v228_v9, 0.0 }
  0xfa   :  { %v347_v19 = vpack.c.bf16 %v331_v12, %v327_v11  ;;  %v334_v20 = vmax.f32 %v301_v13, 0.0 }
  0xfb   :  { %v349_v21 = vpack.c.bf16 %v333_v16, %v329_v14  ;;  %v348_v22 = vpack.c.bf16 %v332_v17, %v328_v15 }
  0xfc   :  { %v350_v23 = vpack.c.bf16 %v334_v20, %v330_v18 }
  0xfd   :  { %394 = vmatprep.subr.bf16.mxu0 %v348_v22 }
  0xfe   :  { %447 = vmatprep.subr.bf16.mxu1 %v350_v23  ;;  %395 = vmatpush1.bf16.msra.mxu0 %v347_v19  ;;  %v768_v23 = vld [vmem:[%s950_s5] sm:$0xff]  }
  0xff   :  { %448 = vmatpush1.bf16.msra.mxu1 %v349_v21 }
 0x101   :  { %750 = vmatmul.mubr.msk.bf16.vlgmr.msra.gmra.mrb[16].mxu0 %vm381_vm2, %v766_v24 }
 0x102   :  { %752 = vmatmul.mubr.msk.bf16.vlgmr.msra.gmra.mrb[16].mxu1 %vm381_vm2, %v766_v24  ;;  %430 = vmatprep.mubr.bf16.mxu0 %v769_v3  ;;  %v521_v24 = vpop.permute.xlu0 %520 }
 0x103   :  { %483 = vmatprep.mubr.bf16.mxu1 %v769_v3 }
 0x109   :  { %751 = vmatmul.mubr.msk.bf16.gmra.mrb[20].mxu0 %vm381_vm2, %v767_v25 }
 0x10a   :  { %753 = vmatmul.mubr.msk.bf16.gmra.mrb[20].mxu1 %vm381_vm2, %v767_v25  ;;  %569 = vmatprep.mubr.bf16.mxu0 %v769_v3  ;;  %v526_v25 = vpop.permute.xlu1 %525 }
 0x10b   :  { %612 = vmatprep.mubr.bf16.mxu1 %v769_v3 }
 0x1d4   :  { %v422_v28 = vpop.f32.mrb[16].mxu0 }
 0x1d5   :  { %v423_v29 = vadd.f32 %v422_v28, %v354_v26  ;;  %v475_v30 = vpop.f32.mrb[16].mxu1  ;;  %v424_v31 = vpop.f32.mrb[17].mxu0 }
 0x1d6   :  { %v476_v32 = vadd.f32 %v475_v30, %v354_v26  ;;  %v425_v33 = vadd.f32 %v424_v31, %v354_v26  ;;  %v477_v34 = vpop.f32.mrb[17].mxu1  ;;  %v426_v35 = vpop.f32.mrb[18].mxu0 }
 0x1d7   :  { %v478_v36 = vadd.f32 %v477_v34, %v354_v26  ;;  %v427_v37 = vadd.f32 %v426_v35, %v359_v27  ;;  %v479_v38 = vpop.f32.mrb[18].mxu1  ;;  %v428_v39 = vpop.f32.mrb[19].mxu0  ;;  %v494_v43 = vmax.f32 %v423_v29, 0.0 }
 0x1d8   :  { %v480_v40 = vadd.f32 %v479_v38, %v359_v27  ;;  %v429_v41 = vadd.f32 %v428_v39, %v359_v27  ;;  %v481_v42 = vpop.f32.mrb[19].mxu1  ;;  %v496_v46 = vmax.f32 %v476_v32, 0.0  ;;  %v495_v47 = vmax.f32 %v425_v33, 0.0 }
 0x1d9   :  { %v498_v44 = vmax.f32 %v427_v37, 0.0  ;;  %v482_v45 = vadd.f32 %v481_v42, %v359_v27  ;;  %v497_v51 = vmax.f32 %v478_v36, 0.0 }
 0x1da   :  { %v500_v48 = vmax.f32 %v480_v40, 0.0  ;;  %v499_v49 = vmax.f32 %v429_v41, 0.0 }
 0x1db   :  { %v510_v52 = vpack.c.bf16 %v498_v44, %v494_v43  ;;  %v501_v53 = vmax.f32 %v482_v45, 0.0 }
 0x1dc   :  { %v512_v55 = vpack.c.bf16 %v500_v48, %v496_v46  ;;  %v511_v56 = vpack.c.bf16 %v499_v49, %v495_v47  ;;  %v432_v57 = vpop.f32.mrb[20].mxu0 }
 0x1dd   :  { %v513_v58 = vpack.c.bf16 %v501_v53, %v497_v51  ;;  %v433_v59 = vadd.f32 %v432_v57, %v364_v50  ;;  %v485_v60 = vpop.f32.mrb[20].mxu1  ;;  %v434_v61 = vpop.f32.mrb[21].mxu0  ;;  %v61_v53 = vld [vmem:[%s951_s7] sm:$0xf] }
 0x1de   :  { %v486_v62 = vadd.f32 %v485_v60, %v364_v50  ;;  %v435_v63 = vadd.f32 %v434_v61, %v364_v50  ;;  %v487_v0 = vpop.f32.mrb[21].mxu1  ;;  %v436_v1 = vpop.f32.mrb[22].mxu0  ;;  %537 = vmatprep.subr.bf16.mxu0 %v511_v56 }
 0x1df   :  { %v488_v2 = vadd.f32 %v487_v0, %v364_v50  ;;  %v437_v4 = vadd.f32 %v436_v1, %v369_v54  ;;  %v489_v5 = vpop.f32.mrb[22].mxu1  ;;  %580 = vmatprep.subr.bf16.mxu1 %v513_v58  ;;  %v438_v6 = vpop.f32.mrb[23].mxu0  ;;  %538 = vmatpush1.bf16.msra.mxu0 %v510_v52  ;;  %v502_v10 = vmax.f32 %v433_v59, 0.0 }
 0x1e0   :  { %v490_v7 = vadd.f32 %v489_v5, %v369_v54  ;;  %v439_v8 = vadd.f32 %v438_v6, %v369_v54  ;;  %v491_v9 = vpop.f32.mrb[23].mxu1  ;;  %581 = vmatpush1.bf16.msra.mxu1 %v512_v55  ;;  %v504_v13 = vmax.f32 %v486_v62, 0.0  ;;  %v503_v14 = vmax.f32 %v435_v63, 0.0 }
 0x1e1   :  { %v506_v11 = vmax.f32 %v437_v4, 0.0  ;;  %v492_v12 = vadd.f32 %v491_v9, %v369_v54  ;;  %v505_v17 = vmax.f32 %v488_v2, 0.0  ;;  %v638_v54 = vpop.permute.xlu0 %637 }
 0x1e2   :  { %v508_v15 = vmax.f32 %v490_v7, 0.0  ;;  %v507_v16 = vmax.f32 %v439_v8, 0.0 }
 0x1e3   :  { %v514_v18 = vpack.c.bf16 %v506_v11, %v502_v10  ;;  %v509_v19 = vmax.f32 %v492_v12, 0.0 }
 0x1e4   :  { %v516_v20 = vpack.c.bf16 %v508_v15, %v504_v13  ;;  %v515_v21 = vpack.c.bf16 %v507_v16, %v503_v14 }
 0x1e5   :  { %v517_v22 = vpack.c.bf16 %v509_v19, %v505_v17 }
 0x1e6   :  { %539 = vmatprep.subr.bf16.mxu0 %v515_v21 }
 0x1e7   :  { %582 = vmatprep.subr.bf16.mxu1 %v517_v22  ;;  %540 = vmatpush1.bf16.msra.mxu0 %v514_v18 }
 0x1e8   :  { %583 = vmatpush1.bf16.msra.mxu1 %v516_v20 }
 0x1ea   :  { %755 = vmatmul.mubr.msk.bf16.vlgmr.msra.gmra.mrb[24].mxu0 %vm533_vm3, %v768_v23 }
 0x1eb   :  { %756 = vmatmul.mubr.msk.bf16.vlgmr.msra.gmra.mrb[24].mxu1 %vm533_vm3, %v768_v23  ;;  %676 = vmatprep.mubr.bf16.mxu0 %v769_v3 }
 0x1ec   :  { %717 = vmatprep.mubr.bf16.mxu1 %v769_v3 }
 0x2bd   :  { %v571_v26 = vpop.f32.mrb[24].mxu0 }
 0x2be   :  { %v572_v27 = vadd.f32 %v571_v26, %v521_v24  ;;  %v614_v28 = vpop.f32.mrb[24].mxu1  ;;  %v573_v29 = vpop.f32.mrb[25].mxu0 }
 0x2bf   :  { %v615_v30 = vadd.f32 %v614_v28, %v521_v24  ;;  %v574_v31 = vadd.f32 %v573_v29, %v521_v24  ;;  %v616_v32 = vpop.f32.mrb[25].mxu1  ;;  %v575_v33 = vpop.f32.mrb[26].mxu0 }
 0x2c0   :  { %v617_v34 = vadd.f32 %v616_v32, %v521_v24  ;;  %v576_v35 = vadd.f32 %v575_v33, %v526_v25  ;;  %v618_v36 = vpop.f32.mrb[26].mxu1  ;;  %v577_v37 = vpop.f32.mrb[27].mxu0  ;;  %v623_v41 = vmax.f32 %v572_v27, 0.0 }
 0x2c1   :  { %v619_v38 = vadd.f32 %v618_v36, %v526_v25  ;;  %v578_v39 = vadd.f32 %v577_v37, %v526_v25  ;;  %v620_v40 = vpop.f32.mrb[27].mxu1  ;;  %v625_v43 = vmax.f32 %v615_v30, 0.0  ;;  %v624_v44 = vmax.f32 %v574_v31, 0.0 }
 0x2c2   :  { %v627_v42 = vmax.f32 %v576_v35, 0.0  ;;  %v621_v3 = vadd.f32 %v620_v40, %v526_v25  ;;  %v626_v47 = vmax.f32 %v617_v34, 0.0 }
 0x2c3   :  { %v629_v45 = vmax.f32 %v619_v38, 0.0  ;;  %v628_v46 = vmax.f32 %v578_v39, 0.0 }
 0x2c4   :  { %v631_v48 = vpack.c.bf16 %v627_v42, %v623_v41  ;;  %v630_v49 = vmax.f32 %v621_v3, 0.0 }
 0x2c5   :  { %v633_v50 = vpack.c.bf16 %v629_v45, %v625_v43  ;;  %v632_v51 = vpack.c.bf16 %v628_v46, %v624_v44 }
 0x2c6   :  { %v634_v52 = vpack.c.bf16 %v630_v49, %v626_v47 }
 0x2c7   :  { %644 = vmatprep.subr.bf16.mxu0 %v632_v51 }
 0x2c8   :  { %685 = vmatprep.subr.bf16.mxu1 %v634_v52  ;;  %645 = vmatpush1.bf16.msra.mxu0 %v631_v48 }
 0x2c9   :  { %686 = vmatpush1.bf16.msra.mxu1 %v633_v50 }
 0x2cb   :  { %757 = vmatmul.mubr.msk.bf16.vlgmr.msra.gmra.mrb[28].mxu0 %vm640_vm4, %v61_v53 }
 0x2cc   :  { %758 = vmatmul.mubr.msk.bf16.vlgmr.msra.gmra.mrb[28].mxu1 %vm640_vm4, %v61_v53 }
 0x39e   :  { %v678_v55 = vpop.f32.mrb[28].mxu0 }
 0x39f   :  { %v679_v56 = vadd.f32 %v678_v55, %v638_v54  ;;  %v719_v57 = vpop.f32.mrb[28].mxu1  ;;  %v680_v58 = vpop.f32.mrb[29].mxu0 }
 0x3a0   :  { %v720_v59 = vadd.f32 %v719_v57, %v638_v54  ;;  %v681_v60 = vadd.f32 %v680_v58, %v638_v54  ;;  %v721_v61 = vpop.f32.mrb[29].mxu1  ;;  %v682_v62 = vpop.f32.mrb[30].mxu0 }
 0x3a1   :  { %726 = vst [vmem:[%s952_s9] sm:$0x7f] %v679_v56  ;;  %v722_v63 = vadd.f32 %v721_v61, %v638_v54  ;;  %v723_v0 = vpop.f32.mrb[30].mxu1  ;;  %v683_v1 = vpop.f32.mrb[31].mxu0 }
 0x3a2   :  { %728 = vst [vmem:[%s952_s9 + $0x10] sm:$0x7f] %v720_v59  ;;  %727 = vst [vmem:[%s952_s9 + $0x8] sm:$0x7f] %v681_v60  ;;  %v724_v2 = vpop.f32.mrb[31].mxu1 }
 0x3a3   :  { %729 = vst [vmem:[%s952_s9 + $0x18] sm:$0x7f] %v722_v63 }

</bundles_post_ra>
